<compile_context>
chip_gen: v6e
topology: v6e:2x2x1
jax: 0.10.0
libtpu: 0.0.40
codegen_flags: <defaults>
</compile_context>

<pallas_src>
import jax
import jax.numpy as jnp
from jax.experimental import pallas as pl
from jax.experimental.pallas import tpu as pltpu


def ctrgc2_fused_kernel(x_ref, x1_ref, w_ref, b_ref, o_ref):
    # x_ref : (1, C_in,  T*V)  -- one sample of x, (T, V) flattened (lane-dense load)
    # x1_ref: (1, C_out, U, V)
    # w_ref : (C_out, C_in)
    # b_ref : (C_out, 1)
    # o_ref : (1, C_out, T*U)  -- lane-dense output block
    C_out = w_ref.shape[0]
    U, V = x1_ref.shape[2], x1_ref.shape[3]
    T = x_ref.shape[2] // V

    # --- 1x1 conv: channel mix as one MXU matmul, f32 accumulation, fused bias ---
    x3 = jnp.dot(w_ref[...], x_ref[0], preferred_element_type=jnp.float32)  # (C_out, T*V)
    x3 = x3 + b_ref[...]                                                    # (C_out, 1) bcast
    # Small in-VMEM relayout so V sits on the contraction axis; x3 never touches HBM.
    x3 = x3.reshape(C_out, T, V)

    # --- einsum('cuv,ctv->ctu'): batched over C_out, contract V ---
    out = jax.lax.dot_general(
        x3,
        x1_ref[0].astype(jnp.float32),
        dimension_numbers=(((2,), (2,)), ((0,), (0,))),
        preferred_element_type=jnp.float32,
    )  # (C_out, T, U)

    # Lane-dense store: flatten (T, U) so the stored last dim is T*U (>= 128 in practice).
    o_ref[0] = out.reshape(C_out, T * U).astype(o_ref.dtype)


def ctrgc2_forward(x, x1, w, b):
    """x: (N, C_in, T, V); x1: (N, C_out, U, V); w: Conv2d weight (C_out, C_in[,1,1]); b: (C_out,)."""
    N, C_in, T, V = x.shape
    U = x1.shape[2]
    C_out = w.shape[0]

    # Free, contiguous reshapes -- no transposes, no extra HBM passes.
    x_flat = x.reshape(N, C_in, T * V)
    w2 = w.reshape(C_out, C_in)      # accepts (C_out, C_in) or (C_out, C_in, 1, 1)
    b2 = b.reshape(C_out, 1)

    out_flat = pl.pallas_call(
        ctrgc2_fused_kernel,
        out_shape=jax.ShapeDtypeStruct((N, C_out, T * U), x.dtype),
        grid=(N,),
        in_specs=[
            pl.BlockSpec((1, C_in, T * V), lambda n: (n, 0, 0)),
            pl.BlockSpec((1, C_out, U, V), lambda n: (n, 0, 0, 0)),
            pl.BlockSpec((C_out, C_in), lambda n: (0, 0)),   # weights resident across grid
            pl.BlockSpec((C_out, 1), lambda n: (0, 0)),
        ],
        out_specs=pl.BlockSpec((1, C_out, T * U), lambda n: (n, 0, 0)),
        compiler_params=pltpu.CompilerParams(
            dimension_semantics=("parallel",),
        ),
    )(x_flat, x1, w2, b2)

    # Free metadata reshape back to the PyTorch layout.
    return out_flat.reshape(N, C_out, T, U)


if __name__ == "__main__":
    N, C_in, C_out, T, V, U = 2, 4, 8, 16, 16, 16

    key = jax.random.PRNGKey(0)
    k1, k2, k3, k4 = jax.random.split(key, 4)
    x = jax.random.normal(k1, (N, C_in, T, V), jnp.float32)
    x1 = jax.random.normal(k2, (N, C_out, U, V), jnp.float32)

    # Conv2d(in_channels, out_channels, kernel_size=1) parameters (native layout):
    w = jax.random.normal(k3, (C_out, C_in, 1, 1), jnp.float32) * 0.1
    b = jax.random.normal(k4, (C_out,), jnp.float32) * 0.1

    out = jax.block_until_ready(ctrgc2_forward(x, x1, w, b))

    # Pure-JAX reference for correctness
    w2 = w.reshape(C_out, C_in)
    x3_ref = jnp.einsum("oc,nctv->notv", w2, x) + b[None, :, None, None]
    ref = jnp.einsum("ncuv,nctv->nctu", x1, x3_ref)
    assert out.shape == (N, C_out, T, U)
    assert jnp.allclose(out, ref, atol=1e-4, rtol=1e-4)

    print("KERNEL_OK")
</pallas_src>

<mosaic_0001>
module attributes {stable_mosaic.version = 11 : i64} {
  func.func @ctrgc2_fused_kernel(%arg0: i32, %arg1: memref<1x4x256xf32, #tpu.memory_space<vmem>>, %arg2: memref<1x8x16x16xf32, #tpu.memory_space<vmem>>, %arg3: memref<8x4xf32, #tpu.memory_space<vmem>>, %arg4: memref<8x1xf32, #tpu.memory_space<vmem>>, %arg5: memref<1x8x256xf32, #tpu.memory_space<vmem>>) attributes {dimension_semantics = [#tpu.dimension_semantics<parallel>], iteration_bounds = array<i64: 2>, scalar_prefetch = 0 : i64, scratch_operands = 0 : i64, tpu.core_type = #tpu.core_type<tc>, window_params = [{transform_indices = @transform_0, window_bounds = array<i64: 1, 4, 256>}, {transform_indices = @transform_1, window_bounds = array<i64: 1, 8, 16, 16>}, {pipeline_mode = #tpu.pipeline_mode<synchronous>, transform_indices = @transform_2, window_bounds = array<i64: 8, 4>}, {pipeline_mode = #tpu.pipeline_mode<synchronous>, transform_indices = @transform_3, window_bounds = array<i64: 8, 1>}, {transform_indices = @transform_4, window_bounds = array<i64: 1, 8, 256>}]} {
    %c0 = arith.constant 0 : index
    %c0_0 = arith.constant 0 : index
    %0 = vector.load %arg3[%c0, %c0_0] : memref<8x4xf32, #tpu.memory_space<vmem>>, vector<8x4xf32>
    %c0_1 = arith.constant 0 : index
    %c0_2 = arith.constant 0 : index
    %c0_3 = arith.constant 0 : index
    %1 = vector.load %arg1[%c0_1, %c0_2, %c0_3] : memref<1x4x256xf32, #tpu.memory_space<vmem>>, vector<1x4x256xf32>
    %2 = vector.shape_cast %1 : vector<1x4x256xf32> to vector<4x256xf32>
    %cst = arith.constant dense<0.000000e+00> : vector<8x256xf32>
    %3 = tpu.matmul %0, %2, %cst {dimension_numbers = #tpu.dot_dimension_numbers<[1], [0], [0], [1], [0, 0, 1, 1], [], []>} : vector<8x4xf32>, vector<4x256xf32>, vector<8x256xf32> -> vector<8x256xf32>
    %c0_4 = arith.constant 0 : index
    %c0_5 = arith.constant 0 : index
    %4 = vector.load %arg4[%c0_4, %c0_5] : memref<8x1xf32, #tpu.memory_space<vmem>>, vector<8x1xf32>
    %5 = vector.broadcast %4 : vector<8x1xf32> to vector<8x256xf32>
    %6 = arith.addf %3, %5 : vector<8x256xf32>
    %7 = vector.shape_cast %6 : vector<8x256xf32> to vector<8x16x16xf32>
    %c0_6 = arith.constant 0 : index
    %c0_7 = arith.constant 0 : index
    %c0_8 = arith.constant 0 : index
    %c0_9 = arith.constant 0 : index
    %8 = vector.load %arg2[%c0_6, %c0_7, %c0_8, %c0_9] : memref<1x8x16x16xf32, #tpu.memory_space<vmem>>, vector<1x8x16x16xf32>
    %9 = vector.shape_cast %8 : vector<1x8x16x16xf32> to vector<8x16x16xf32>
    %cst_10 = arith.constant dense<0.000000e+00> : vector<8x16x16xf32>
    %10 = tpu.matmul %7, %9, %cst_10 {dimension_numbers = #tpu.dot_dimension_numbers<[2], [2], [1], [1], [0, 0, 0, 1, 1, 1], [0], [0]>} : vector<8x16x16xf32>, vector<8x16x16xf32>, vector<8x16x16xf32> -> vector<8x16x16xf32>
    %11 = vector.shape_cast %10 : vector<8x16x16xf32> to vector<8x256xf32>
    %c0_11 = arith.constant 0 : index
    %c0_12 = arith.constant 0 : index
    %c0_13 = arith.constant 0 : index
    %12 = vector.load %arg5[%c0_11, %c0_12, %c0_13] : memref<1x8x256xf32, #tpu.memory_space<vmem>>, vector<1x8x256xf32>
    %13 = vector.shape_cast %12 : vector<1x8x256xf32> to vector<8x256xf32>
    %14 = vector.shape_cast %11 : vector<8x256xf32> to vector<1x8x256xf32>
    tpu.vector_store %arg5[%c0_11, %c0_12, %c0_13], %14 {strides = array<i32>} : memref<1x8x256xf32, #tpu.memory_space<vmem>>, vector<1x8x256xf32>,
    return
  }
  func.func @transform_0(%arg0: i32) -> (i32, i32, i32) {
    %c0_i32 = arith.constant 0 : i32
    %c0_i32_0 = arith.constant 0 : i32
    %c0_i32_1 = arith.constant 0 : i32
    return %arg0, %c0_i32, %c0_i32_0 : i32, i32, i32
  }
  func.func @transform_1(%arg0: i32) -> (i32, i32, i32, i32) {
    %c0_i32 = arith.constant 0 : i32
    %c0_i32_0 = arith.constant 0 : i32
    %c0_i32_1 = arith.constant 0 : i32
    %c0_i32_2 = arith.constant 0 : i32
    return %arg0, %c0_i32, %c0_i32_0, %c0_i32_1 : i32, i32, i32, i32
  }
  func.func @transform_2(%arg0: i32) -> (i32, i32) {
    %c0_i32 = arith.constant 0 : i32
    %c0_i32_0 = arith.constant 0 : i32
    %c0_i32_1 = arith.constant 0 : i32
    return %c0_i32, %c0_i32_0 : i32, i32
  }
  func.func @transform_3(%arg0: i32) -> (i32, i32) {
    %c0_i32 = arith.constant 0 : i32
    %c0_i32_0 = arith.constant 0 : i32
    %c0_i32_1 = arith.constant 0 : i32
    return %c0_i32, %c0_i32_0 : i32, i32
  }
  func.func @transform_4(%arg0: i32) -> (i32, i32, i32) {
    %c0_i32 = arith.constant 0 : i32
    %c0_i32_0 = arith.constant 0 : i32
    %c0_i32_1 = arith.constant 0 : i32
    return %arg0, %c0_i32, %c0_i32_0 : i32, i32, i32
  }
}

</mosaic_0001>

<bundles_post_ra>
// kernel: tpu_custom_call.1
= control target key start
LH: loop header
LB: loop body
LE: loop exit
PB: predicated region body
PF: predicated region fallthrough
CT: control target
= control target key end

     0   :  { %9 = vsyncpa [#allocation3], 0  ;;  %s2563_s0 = inlined_call_operand.vmem [shape: f32[2,4,256], index: 0, kind: input, shape index: {}]   ;;  %s2564_s1 = inlined_call_operand.hbm [shape: f32[2,8,16,16], index: 1, kind: input, shape index: {}]   ;;  %s2565_s2 = inlined_call_operand.vmem [shape: f32[8,4], index: 2, kind: input, shape index: {}]   ;;  %s2566_s3 = inlined_call_operand.vmem [shape: f32[8,1], index: 3, kind: input, shape index: {}]   ;;  %s2567_s4 = inlined_call_operand.hbm [shape: f32[2,8,256], index: 4, kind: output, shape index: {}]  }
   0x1   :  { %11 = vsyncpa [#allocation3 + $0x1], 0 }
   0x2   :  { %12 = vsyncpa [#allocation4], 0 }
   0x3   :  { %14 = vsyncpa [#allocation4 + $0x1], 0  ;;  %s2139_s15 = smov 0   ;;  %s2141_s16 = smov 0  }
   0x4   :  { %s2143_s17 = smov 0   ;;  %s2145_s18 = smov 0  }
   0x5 LB: > { %s2160_s19 = sadd.s32 4294967295, %s2097_s18   ;;  %s1802_s20 = sadd.s32 4294967294, %s2097_s18   ;;  %s2097_s18 = sphi %s2145_s18, %s2582_s18   ;;  %s2093_s17 = sphi %s2143_s17, %s2581_s17   ;;  %s2089_s16 = sphi %s2141_s16, %s2580_s16   ;;  %s2085_s15 = sphi %s2139_s15, %s2579_s15  }
   0x6   : > { %s2164_s21 = sadd.s32 1, %s2097_s18   ;;  %s53_s22 = sadd.s32 1, %s2093_s17 }
   0x7   : > { %s50_s23 = ssub.s32 %s2097_s18, %s2164_s21  ;;  %p60_p0 = scmp.ne.s32.totalorder %s2093_s17, %s2089_s16 }
   0x8   : > { %p51_p1 = scmp.eq.s32.totalorder %s50_s23, 0  ;;  %p61_p2 = scmp.eq.s32.totalorder %s2097_s18, 0 }
   0x9   : > { %p66_p3 = scmp.ne.s32.totalorder %s2089_s16, %s2085_s15  ;;  %p67_p4 = scmp.eq.s32.totalorder %s2160_s19, 0 }
   0xa   : > { %s2176_s24 = scalar_select %p51_p1, %s2093_s17, %s53_s22  }
   0xb   : > { %p2178_p5 = por %p61_p2, %p60_p0  ;;  %p2182_p6 = por %p67_p4, %p66_p3 }
   0xc   : > { %p132_p7 = scmp.eq.s32.totalorder %s2160_s19, 1  ;;  %p138_p8 = scmp.eq.s32.totalorder %s1802_s20, 1 }
   0xd   : > { %s2571_s26 = scalar_select %p2182_p6, 1, 0 }
   0xe   : > { %p1956_p10 = scmp.lt.s32.totalorder %s2097_s18, 2  ;;  %p2189_p11 = por %p132_p7, %p60_p0 }
   0xf   : > { %p2193_p12 = por %p138_p8, %p66_p3  ;;  %s172_s29 = sand.u32 1, %s2093_s17  }
  0x10   : > { %s2572_s27 = scalar_select %p2189_p11, 1, 0 }
  0x11   : > { %s2573_s28 = scalar_select %p2193_p12, 1, 0 }
  0x12   : > { %s1853_s30 = sshll.u32 %s2097_s18, 11  ;;  %s1805_s5 = sshll.u32 %s172_s29, 7 }
  0x13   : > { %s2202_s8 = scalar_lea.hbm %s2564_s1, %s1853_s30  ;;  %s176_s9 = scalar_lea.vmem [#allocation2], %s1805_s5 }
  0x14   : > { %s183_s10 = sshll.u32 %s176_s9, 4  ;;  %p2206_p13 = pnand %p1956_p10, %p2178_p5  ;;  %s2210_s10 = int_to_ptr.vmem [resolvable:$true] %s183_s10 }
  0x15   : > { %s2212_s12 = scalar_lea.sflag [#allocation3], %s172_s29  ;;  %s2005_s13 = scalar_lea.hbm %s2202_s8, 2048 }
  0x16   : > { %p2006_p0 = scmp.ne.s32.totalorder %s2202_s8, %s2005_s13  ;;  %p2007_p1 = pneg %p2206_p13 }
  0x17   : > { %s2010_s22 = scalar_lea.hbm %s2564_s1, 4096  ;;  %p2011_p4 = scmp.lt.s32.totalorder %s2202_s8, %s2564_s1 }
  0x18   : > { %p2008_p2 = pnand %p2007_p1, %p2006_p0  ;;  %p2012_p5 = scmp.lt.s32.totalorder %s2010_s22, %s2005_s13 }
  0x1a   : > { %p2009_p3 = pneg %p2008_p2  ;;  %p2013_p7 = por %p2012_p5, %p2011_p4 }
  0x1c   : > { %p2014_p8 = pnand %p2013_p7, %p2009_p3 }
  0x1e   : > { %2017 = shalt.err (!%p2014_p8)
}
  0x1f   : > { %s2018_s29 = scalar_lea.vmem %s2210_s10, 2048  ;;  %s2099_s30 = smov [#allocation2]  }
  0x20   : > { %p2019_p10 = scmp.ne.s32.totalorder %s2210_s10, %s2018_s29  ;;  %s2023_s5 = sshll.u32 %s2099_s30, 4  ;;  %s2024_s5 = int_to_ptr.vmem [resolvable:$false] %s2023_s5 }
  0x21   : > { %s2025_s6 = scalar_lea.vmem %s2024_s5, 4096  ;;  %p2026_p2 = scmp.lt.s32.totalorder %s2210_s10, %s2024_s5 }
  0x22   : > { %p2021_p9 = pnand %p2019_p10, %p2007_p1  ;;  %p2027_p12 = scmp.lt.s32.totalorder %s2025_s6, %s2018_s29 }
  0x24   : > { %p2022_p0 = pneg %p2021_p9  ;;  %p2028_p11 = por %p2027_p12, %p2026_p2 }
  0x26   : > { %p2029_p6 = pnand %p2028_p11, %p2022_p0 }
  0x28   : > { %2032 = shalt.err (!%p2029_p6)
}
  0x29   : > { %s2100_s7 = smov 128   ;;  %s2101_s9 = smov 8  }
  0x2a   : > { %1951 = dma.hbm_to_vmem [thread:$0]  (!%p2206_p13), %s2202_s8, 2048, %s2210_s10, %s2212_s12, %s2100_s7, %s2100_s7, %s2101_s9  }
  0x2b   : > { %p1808_p9 = scmp.ge.s32.totalorder %s2097_s18, 1  ;;  %p191_p1 = scmp.lt.s32.totalorder %s2097_s18, 3 }
  0x2d   : > { %p192_p3 = pnand %p1808_p9, %p191_p1 }
  0x2e   : > { %s2236_s13 = sand.u32 (!%p192_p3), 1, %s2089_s16   ;;  %p2575_p6 = scmp.ne.s32.totalorder (!%p192_p3), %s2571_s26, 0 }
  0x2f   : > { %195 = sbr.rel (%p192_p3) target bundleno = 791 (0x317), region = 36  ;;  %s1809_s14 = sshll.u32 (!%p192_p3), %s2236_s13, 7 }
  0x30   : > { %s198_s20 = scalar_lea.sflag (!%p192_p3), [#allocation3], %s2236_s13  ;;  %s2240_s22 = scalar_lea.vmem (!%p192_p3), [#allocation2], %s1809_s14 }
  0x34   : > { %2076 = dma.done.wait (%p2575_p6), %s198_s20, 2048  }
  0x35   : > { %2078 = vsyncadd (%p2575_p6), %s198_s20, 4294965248  ;;  %p231_p11 = scmp.lt.s32.totalorder %s2160_s19, 1  ;;  %v2102_v0 = vmov 0.0   ;;  %v2103_v1 = vmov 0   ;;  %vm250_vm0 = vcmask 1043456   ;;  %v238_v3 = vld [vmem:[%s2566_s3] sm:$0xff]  ;;  %v375_v21 = vlaneseq }
  0x36   : > { %319 = vmatprep.mubr.f32.mxu0 %v2102_v0  ;;  %2003 = vset.pattern.permute.xlu0 %v2103_v1  ;;  %v236_v5 = vld [vmem:[%s2565_s2] sm:$0xff]  ;;  %vm246_vm1 = vcmask 31744   ;;  %s2104_s5 = smov 96   ;;  %s2105_s6 = smov 112   ;;  %vm658_vm2 = vcmask 130048   ;;  %v643_v11 = vld [vmem:[%s2240_s22 + $0x8] sm:$0xff] }
  0x37   : > { %s232_s8 = scalar_select %p231_p11, %s2160_s19, 1  ;;  %241 = vperm.xlu0 %2003, %v238_v3   ;;  %v645_v12 = vld [vmem:[%s2240_s22 + $0x18] sm:$0xff]  ;;  %1888 = vmatprep.subr.msk.mxu1 %vm658_vm2, %v643_v11  ;;  %v642_v13 = vld [vmem:[%s2240_s22] sm:$0xff]  ;;  %v644_v14 = vld [vmem:[%s2240_s22 + $0x10] sm:$0xff]  ;;  %v2111_v19 = vmov 1983009808  }
  0x38   : > { %s2106_s7 = smov 80   ;;  %s2107_s9 = smov 64   ;;  %1889 = vmatpush3.xpose.msk.msra.mxu1 %vm658_vm2, %v643_v11  ;;  %v2298_v15 = vld [vmem:[%s2240_s22 + $0x28] sm:$0xff]  ;;  %v2301_v16 = vld [vmem:[%s2240_s22 + $0x38] sm:$0xff]  ;;  %v373_v20 = vunpack.c.l.s4 %v2111_v19  ;;  %v376_v25 = vshrl.u32 %v375_v21, 7  ;;  %vm1684_vm3 = vcmask 261120  }
  0x39   : > { %s1854_s10 = sshll.u32 %s232_s8, 3  ;;  %s2108_s14 = smov 48   ;;  %1890 = vmatprep.subr.msk.mxu1 %vm658_vm2, %v642_v13  ;;  %v2112_v28 = vmov 1934713408   ;;  %vm1686_vm4 = vcmask 392192   ;;  %vm1688_vm5 = vcmask 523264  }
  0x3a   : > { %s235_s23 = scalar_lea.vmem %s2563_s0, %s1854_s10  ;;  %s2109_s20 = smov 32   ;;  %v374_v24 = vunpack.c.0.s8 %v373_v20  ;;  %v437_v29 = vunpack.c.l.s4 %v2112_v28  ;;  %vm1690_vm6 = vcmask 654336   ;;  %vm1692_vm7 = vcmask 785408  }
  0x3b   : > { %v237_v2 = vld [vmem:[%s235_s23] sm:$0xff]  ;;  %s2110_s8 = smov 16   ;;  %vm1694_vm8 = vcmask 916480   ;;  %s1855_s12 = sshll.u32 %s2160_s19, 8 }
  0x3c   : > { %v245_v4 = vcombine.high %v237_v2, %v237_v2  ;;  %1891 = vmatpush3.xpose.msk.msra.mxu1 %vm658_vm2, %v642_v13  ;;  %v2313_v31 = vsub.s32 %v374_v24, %v376_v25  ;;  %v438_v36 = vunpack.c.0.s8 %v437_v29  ;;  %v646_v29 = vld [vmem:[%s2240_s22 + $0x20] sm:$0xff]  ;;  %s2525_s29 = scalar_lea.hbm %s2567_s4, %s1855_s12  ;;  %s1706_s19 = scalar_lea.sflag [#allocation4], %s2236_s13 }
  0x3d   : > { %1902 = vmatprep.subr.msk.mxu1 %vm658_vm2, %v2298_v15  ;;  %p2576_p13 = scmp.ne.s32.totalorder %s2572_s27, 0  ;;  %s2113_s30 = smov [#allocation5]  }
  0x3e   : > { %1813 = vmatprep.subr.msk.mxu0 %vm250_vm0, %v245_v4  ;;  %v2327_v44 = vsub.s32 %v438_v36, %v376_v25  ;;  %v653_v36 = vld [vmem:[%s2240_s22 + $0x58] sm:$0xff] }
  0x3f   : > { %1814 = vmatpush1.msk.msra.mxu0 %vm250_vm0, %v237_v2 }
  0x40   : > { %1815 = vmatmul.mubr.msk.f32.vlgmr.msra.gmra.mxu0 %vm246_vm1, %v236_v5  ;;  %1895 = vmatprep.subr.msk.mxu0 %vm658_vm2, %v645_v12 }
  0x41   : > { %1896 = vmatpush3.xpose.msk.msra.mxu0 %vm658_vm2, %v645_v12 }
  0x42   : > { %1897 = vmatprep.subr.msk.mxu0 %vm658_vm2, %v644_v14 }
  0x45   : > { %1898 = vmatpush3.xpose.msk.msra.mxu0 %vm658_vm2, %v644_v14 }
  0x46   : > { %1909 = vmatprep.subr.msk.mxu0 %vm658_vm2, %v2301_v16 }
  0xb2   : > { %v242_v6 = vpop.permute.xlu0 %241 }
 0x100   : > { %v321_v7 = vpop.f32.mrf.mxu0 }
 0x101   : > { %v2257_v8 = vadd.f32 %v321_v7, %v242_v6 }
 0x102   : > { %v323_v9 = vpop.f32.mrf.mxu0 }
 0x103   : > { %330 = vrot.lane.b32.xlu1 %v2257_v8, %s2104_s5  ;;  %327 = vrot.lane.b32.xlu0 %v2257_v8, %s2105_s6  ;;  %v2271_v10 = vadd.f32 %v323_v9, %v242_v6 }
 0x107   : > { %333 = vrot.lane.b32.xlu1 %v2257_v8, %s2106_s7  ;;  %336 = vrot.lane.b32.xlu0 %v2257_v8, %s2107_s9 }
 0x10b   : > { %339 = vrot.lane.b32.xlu1 %v2257_v8, %s2108_s14  ;;  %342 = vrot.lane.b32.xlu0 %v2257_v8, %s2109_s20 }
 0x10f   : > { %345 = vrot.lane.b32.xlu1 %v2257_v8, %s2110_s8  ;;  %349 = vrot.lane.b32.xlu0 %v2271_v10, %s2105_s6 }
 0x113   : > { %352 = vrot.lane.b32.xlu1 %v2271_v10, %s2104_s5  ;;  %355 = vrot.lane.b32.xlu0 %v2271_v10, %s2106_s7 }
 0x117   : > { %358 = vrot.lane.b32.xlu1 %v2271_v10, %s2107_s9  ;;  %361 = vrot.lane.b32.xlu0 %v2271_v10, %s2108_s14 }
 0x11b   : > { %364 = vrot.lane.b32.xlu1 %v2271_v10, %s2109_s20  ;;  %367 = vrot.lane.b32.xlu0 %v2271_v10, %s2110_s8 }
 0x175   : > { %v2311_v17 = vpop.permute.xlu1 %330  ;;  %v328_v18 = vpop.permute.xlu0 %327 }
 0x176   : > { %v370_v32 = vcombine.low %v2257_v8, %v2311_v17  ;;  %v371_v6 = vcombine.high %v2257_v8, %v2311_v17 }
 0x178   : > { %v378_v39 = vrot.slane %v370_v32, %v2313_v31 }
 0x179   : > { %v334_v22 = vpop.permute.xlu1 %333  ;;  %v337_v23 = vpop.permute.xlu0 %336 }
 0x17a   : > { %v386_v30 = vcombine.low %v328_v18, %v334_v22  ;;  %v387_v2 = vcombine.high %v328_v18, %v334_v22  ;;  %v385_v22 = vrot.slane %v371_v6, %v2313_v31 }
 0x17c   : > { %v394_v37 = vrot.slane %v386_v30, %v2313_v31  ;;  %v2350_v13 = vrot.slane %v387_v2, %v2313_v31  ;;  %v648_v30 = vld [vmem:[%s2240_s22 + $0x30] sm:$0xff] }
 0x17d   : > { %v340_v26 = vpop.permute.xlu1 %339  ;;  %v343_v27 = vpop.permute.xlu0 %342 }
 0x17e   : > { %v402_v33 = vcombine.low %v337_v23, %v343_v27  ;;  %v434_v45 = vcombine.low %v378_v39, %v394_v37  ;;  %v435_v3 = vcombine.high %v378_v39, %v394_v37  ;;  %v403_v4 = vcombine.high %v337_v23, %v343_v27 }
 0x17f   : > { %v450_v32 = vcombine.low %v385_v22, %v2350_v13 }
 0x180   : > { %v410_v41 = vrot.slane %v402_v33, %v2313_v31  ;;  %v442_v52 = vrot.slane %v434_v45, %v2327_v44  ;;  %v449_v14 = vrot.slane %v435_v3, %v2327_v44  ;;  %v417_v18 = vrot.slane %v403_v4, %v2313_v31 }
 0x181   : > { %v346_v34 = vpop.permute.xlu1 %345  ;;  %v2317_v35 = vpop.permute.xlu0 %349  ;;  %v458_v39 = vrot.slane %v450_v32, %v2327_v44 }
 0x182   : > { %v418_v38 = vcombine.low %v340_v26, %v346_v34  ;;  %v419_v61 = vcombine.high %v340_v26, %v346_v34 }
 0x184   : > { %v426_v40 = vrot.slane %v418_v38, %v2313_v31  ;;  %v2344_v7 = vrot.slane %v419_v61, %v2313_v31 }
 0x185   : > { %v2323_v42 = vpop.permute.xlu1 %352  ;;  %v2325_v43 = vpop.permute.xlu0 %355 }
 0x186   : > { %v466_v46 = vcombine.low %v410_v41, %v426_v40  ;;  %v506_v47 = vcombine.low %v2271_v10, %v2323_v42  ;;  %v522_v48 = vcombine.low %v2317_v35, %v2325_v43  ;;  %v467_v62 = vcombine.high %v410_v41, %v426_v40 }
 0x187   : > { %v482_v23 = vcombine.low %v417_v18, %v2344_v7  ;;  %v507_v24 = vcombine.high %v2271_v10, %v2323_v42  ;;  %v523_v25 = vcombine.high %v2317_v35, %v2325_v43  ;;  %v483_v45 = vcombine.high %v417_v18, %v2344_v7 }
 0x188   : > { %v474_v51 = vrot.slane %v466_v46, %v2327_v44  ;;  %v514_v53 = vrot.slane %v506_v47, %v2313_v31  ;;  %v530_v54 = vrot.slane %v522_v48, %v2313_v31  ;;  %v481_v9 = vrot.slane %v467_v62, %v2327_v44  ;;  %v650_v48 = vld [vmem:[%s2240_s22 + $0x40] sm:$0xff] }
 0x189   : > { %v359_v49 = vpop.permute.xlu1 %358  ;;  %v362_v50 = vpop.permute.xlu0 %361  ;;  %v490_v35 = vrot.slane %v482_v23, %v2327_v44  ;;  %v537_v37 = vrot.slane %v523_v25, %v2313_v31  ;;  %v654_v62 = vld [vmem:[%s2240_s22 + $0x60] sm:$0xff] }
 0x18a   : > { %v498_v55 = vcombine.low %v442_v52, %v474_v51  ;;  %v499_v56 = vcombine.high %v442_v52, %v474_v51  ;;  %v570_v63 = vcombine.low %v514_v53, %v530_v54  ;;  %v571_v26 = vcombine.high %v514_v53, %v530_v54  ;;  %v655_v52 = vld [vmem:[%s2240_s22 + $0x68] sm:$0xff] }
 0x18b   : > { %v500_v27 = vcombine.low %v449_v14, %v481_v9  ;;  %v501_v28 = vcombine.high %v449_v14, %v481_v9  ;;  %v502_v43 = vcombine.low %v458_v39, %v490_v35  ;;  %v503_v47 = vcombine.high %v458_v39, %v490_v35 }
 0x18c   : > { %1892 = vmatprep.mubr.msk.f32.mxu1 %vm658_vm2, %v498_v55  ;;  %1899 = vmatprep.mubr.msk.f32.mxu0 %vm658_vm2, %v499_v56  ;;  %v578_v11 = vrot.slane %v570_v63, %v2327_v44  ;;  %v585_v38 = vrot.slane %v571_v26, %v2327_v44  ;;  %v497_v53 = vrot.slane %v483_v45, %v2327_v44  ;;  %v657_v55 = vld [vmem:[%s2240_s22 + $0x78] sm:$0xff] }
 0x18d   : > { %v365_v57 = vpop.permute.xlu1 %364  ;;  %v368_v58 = vpop.permute.xlu0 %367 }
 0x18e   : > { %v538_v59 = vcombine.low %v359_v49, %v365_v57  ;;  %v554_v60 = vcombine.low %v362_v50, %v368_v58  ;;  %v539_v19 = vcombine.high %v359_v49, %v365_v57  ;;  %v555_v8 = vcombine.high %v362_v50, %v368_v58  ;;  %v652_v49 = vld [vmem:[%s2240_s22 + $0x50] sm:$0xff] }
 0x18f   : > { %v451_v50 = vcombine.high %v385_v22, %v2350_v13 }
 0x190   : > { %v546_v0 = vrot.slane %v538_v59, %v2313_v31  ;;  %v562_v1 = vrot.slane %v554_v60, %v2313_v31  ;;  %v553_v10 = vrot.slane %v539_v19, %v2313_v31  ;;  %v569_v33 = vrot.slane %v555_v8, %v2313_v31 }
 0x191   : > { %v465_v56 = vrot.slane %v451_v50, %v2327_v44 }
 0x192   : > { %v602_v5 = vcombine.low %v546_v0, %v562_v1  ;;  %v603_v17 = vcombine.high %v546_v0, %v562_v1  ;;  %v618_v40 = vcombine.low %v553_v10, %v569_v33  ;;  %v619_v57 = vcombine.high %v553_v10, %v569_v33  ;;  %v656_v0 = vld [vmem:[%s2240_s22 + $0x70] sm:$0xff] }
 0x193   : > { %v504_v61 = vcombine.low %v465_v56, %v497_v53  ;;  %v505_v63 = vcombine.high %v465_v56, %v497_v53 }
 0x194   : > { %v610_v12 = vrot.slane %v602_v5, %v2327_v44  ;;  %v617_v34 = vrot.slane %v603_v17, %v2327_v44  ;;  %v626_v51 = vrot.slane %v618_v40, %v2327_v44  ;;  %v633_v1 = vrot.slane %v619_v57, %v2327_v44 }
 0x196   : > { %v635_v20 = vcombine.high %v578_v11, %v610_v12  ;;  %v634_v21 = vcombine.low %v578_v11, %v610_v12  ;;  %v636_v41 = vcombine.low %v585_v38, %v617_v34  ;;  %v637_v42 = vcombine.high %v585_v38, %v617_v34 }
 0x198   : > { %1893 = vmatmul.mubr.msk.f32.vlgmr.msra.gmra.mxu1 %vm658_vm2, %v634_v21  ;;  %1900 = vmatmul.mubr.msk.f32.vlgmr.msra.gmra.mxu0 %vm658_vm2, %v635_v20 }
 0x199   : > { %1903 = vmatpush3.xpose.msk.msra.mxu1 %vm658_vm2, %v2298_v15  ;;  %1910 = vmatpush3.xpose.msk.msra.mxu0 %vm658_vm2, %v2301_v16  ;;  %v651_v15 = vld [vmem:[%s2240_s22 + $0x48] sm:$0xff]  ;;  %v521_v16 = vrot.slane %v507_v24, %v2313_v31  ;;  %s1810_s22 = sshll.u32 %s2236_s13, 4 }
 0x19a   : > { %1906 = vmatprep.mubr.msk.f32.mxu1 %vm658_vm2, %v500_v27  ;;  %1913 = vmatprep.mubr.msk.f32.mxu0 %vm658_vm2, %v501_v28  ;;  %s230_s10 = scalar_lea.vmem [#allocation5], %s1810_s22 }
 0x19b   : > { %1904 = vmatprep.subr.msk.mxu1 %vm658_vm2, %v646_v29  ;;  %1911 = vmatprep.subr.msk.mxu0 %vm658_vm2, %v648_v30  ;;  %v586_v46 = vcombine.low %v521_v16, %v537_v37  ;;  %v587_v60 = vcombine.high %v521_v16, %v537_v37  ;;  %s1720_s11 = sshll.u32 %s230_s10, 4  ;;  %s1721_s11 = int_to_ptr.vmem [resolvable:$true] %s1720_s11 }
 0x19c   : > { %s2033_s26 = scalar_lea.vmem %s1721_s11, 256 }
 0x19d   : > { %1905 = vmatpush3.xpose.msk.msra.mxu1 %vm658_vm2, %v646_v29  ;;  %1912 = vmatpush3.xpose.msk.msra.mxu0 %vm658_vm2, %v648_v30  ;;  %v594_v54 = vrot.slane %v586_v46, %v2327_v44  ;;  %v601_v2 = vrot.slane %v587_v60, %v2327_v44  ;;  %p2034_p12 = scmp.ne.s32.totalorder %s1721_s11, %s2033_s26 }
 0x19e   : > { %1916 = vmatprep.subr.msk.mxu1 %vm658_vm2, %v651_v15  ;;  %1923 = vmatprep.subr.msk.mxu0 %vm658_vm2, %v653_v36 }
 0x19f   : > { %v638_v58 = vcombine.low %v594_v54, %v626_v51  ;;  %v639_v59 = vcombine.high %v594_v54, %v626_v51  ;;  %v640_v3 = vcombine.low %v601_v2, %v633_v1  ;;  %v641_v4 = vcombine.high %v601_v2, %v633_v1  ;;  %p2035_p4 = pnand %p2034_p12, %p2576_p13 }
 0x1a0   : > { %1907 = vmatmul.mubr.msk.f32.vlgmr.msra.gmra.mxu1 %vm658_vm2, %v636_v41  ;;  %1914 = vmatmul.mubr.msk.f32.vlgmr.msra.gmra.mxu0 %vm658_vm2, %v637_v42 }
 0x1a1   : > { %1917 = vmatpush3.xpose.msk.msra.mxu1 %vm658_vm2, %v651_v15  ;;  %1920 = vmatprep.mubr.msk.f32.mxu1 %vm658_vm2, %v502_v43  ;;  %p2036_p5 = pneg %p2035_p4 }
 0x1a2   : > { %1924 = vmatpush3.xpose.msk.msra.mxu0 %vm658_vm2, %v653_v36  ;;  %1927 = vmatprep.mubr.msk.f32.mxu0 %vm658_vm2, %v503_v47 }
 0x1a3   : > { %1918 = vmatprep.subr.msk.mxu1 %vm658_vm2, %v650_v48  ;;  %1925 = vmatprep.subr.msk.mxu0 %vm658_vm2, %v652_v49 }
 0x1a5   : > { %1919 = vmatpush3.xpose.msk.msra.mxu1 %vm658_vm2, %v650_v48 }
 0x1a6   : > { %1926 = vmatpush3.xpose.msk.msra.mxu0 %vm658_vm2, %v652_v49  ;;  %1930 = vmatprep.subr.msk.mxu1 %vm658_vm2, %v655_v52 }
 0x1a7   : > { %1937 = vmatprep.subr.msk.mxu0 %vm658_vm2, %v657_v55 }
 0x1a8   : > { %1921 = vmatmul.mubr.msk.f32.vlgmr.msra.gmra.mxu1 %vm658_vm2, %v638_v58 }
 0x1a9   : > { %1928 = vmatmul.mubr.msk.f32.vlgmr.msra.gmra.mxu0 %vm658_vm2, %v639_v59  ;;  %1931 = vmatpush3.xpose.msk.msra.mxu1 %vm658_vm2, %v655_v52 }
 0x1aa   : > { %1934 = vmatprep.mubr.msk.f32.mxu1 %vm658_vm2, %v504_v61  ;;  %1938 = vmatpush3.xpose.msk.msra.mxu0 %vm658_vm2, %v657_v55 }
 0x1ab   : > { %1941 = vmatprep.mubr.msk.f32.mxu0 %vm658_vm2, %v505_v63  ;;  %1932 = vmatprep.subr.msk.mxu1 %vm658_vm2, %v654_v62 }
 0x1ac   : > { %1939 = vmatprep.subr.msk.mxu0 %vm658_vm2, %v656_v0 }
 0x1ad   : > { %1933 = vmatpush3.xpose.msk.msra.mxu1 %vm658_vm2, %v654_v62 }
 0x1ae   : > { %1940 = vmatpush3.xpose.msk.msra.mxu0 %vm658_vm2, %v656_v0 }
 0x1b0   : > { %1935 = vmatmul.mubr.msk.f32.vlgmr.msra.gmra.mxu1 %vm658_vm2, %v640_v3 }
 0x1b1   : > { %1942 = vmatmul.mubr.msk.f32.vlgmr.msra.gmra.mxu0 %vm658_vm2, %v641_v4 }
 0x258   : > { %v1894_v5 = vpop.f32.mrf.mxu1  ;;  %v1901_v6 = vpop.f32.mrf.mxu0 }
 0x25a   : > { %v2425_v7 = vpop.f32.mrf.mxu1  ;;  %v2427_v9 = vpop.f32.mrf.mxu0 }
 0x260   : > { %v1908_v11 = vpop.f32.mrf.mxu1  ;;  %v1915_v12 = vpop.f32.mrf.mxu0 }
 0x261   : > { %v1491_v8 = vcombine.low %v1894_v5, %v1908_v11  ;;  %v1507_v17 = vcombine.low %v1901_v6, %v1915_v12  ;;  %v1492_v42 = vcombine.high %v1894_v5, %v1908_v11  ;;  %v1508_v43 = vcombine.high %v1901_v6, %v1915_v12 }
 0x262   : > { %v2429_v13 = vpop.f32.mrf.mxu1  ;;  %v2431_v14 = vpop.f32.mrf.mxu0 }
 0x263   : > { %v1355_v21 = vcombine.low %v2425_v7, %v2429_v13  ;;  %v1371_v22 = vcombine.low %v2427_v9, %v2431_v14  ;;  %v1499_v24 = vrot.slane %v1491_v8, %v2313_v31  ;;  %v1515_v25 = vrot.slane %v1507_v17, %v2313_v31 }
 0x264   : > { %v1356_v48 = vcombine.high %v2425_v7, %v2429_v13  ;;  %v1372_v59 = vcombine.high %v2427_v9, %v2431_v14  ;;  %v1506_v63 = vrot.slane %v1492_v42, %v2313_v31  ;;  %v1522_v0 = vrot.slane %v1508_v43, %v2313_v31 }
 0x265   : > { %v1363_v32 = vrot.slane %v1355_v21, %v2313_v31  ;;  %v1379_v10 = vrot.slane %v1371_v22, %v2313_v31  ;;  %v1555_v15 = vcombine.low %v1499_v24, %v1515_v25  ;;  %v1556_v47 = vcombine.high %v1499_v24, %v1515_v25 }
 0x266   : > { %v1370_v12 = vrot.slane %v1356_v48, %v2313_v31  ;;  %v1386_v13 = vrot.slane %v1372_v59, %v2313_v31 }
 0x267   : > { %v1419_v45 = vcombine.low %v1363_v32, %v1379_v10  ;;  %v2448_v49 = vrot.slane %v1555_v15, %v2327_v44  ;;  %v1420_v60 = vcombine.high %v1363_v32, %v1379_v10  ;;  %v1570_v1 = vrot.slane %v1556_v47, %v2327_v44 }
 0x268   : > { %v1922_v18 = vpop.f32.mrf.mxu1  ;;  %v1435_v21 = vcombine.low %v1370_v12, %v1386_v13  ;;  %v1436_v10 = vcombine.high %v1370_v12, %v1386_v13 }
 0x269   : > { %v1929_v19 = vpop.f32.mrf.mxu0  ;;  %v2461_v61 = vrot.slane %v1419_v45, %v2327_v44  ;;  %v1434_v14 = vrot.slane %v1420_v60, %v2327_v44 }
 0x26a   : > { %v1085_v20 = vpop.f32.mrf.mxu1 }
 0x26b   : > { %v1172_v23 = vpop.f32.mrf.mxu0 }
 0x270   : > { %v1936_v26 = vpop.f32.mrf.mxu1 }
 0x271   : > { %v1523_v27 = vcombine.low %v1922_v18, %v1936_v26  ;;  %v1943_v28 = vpop.f32.mrf.mxu0  ;;  %v1524_v38 = vcombine.high %v1922_v18, %v1936_v26  ;;  %v1571_v18 = vcombine.low %v1506_v63, %v1522_v0  ;;  %v1443_v26 = vrot.slane %v1435_v21, %v2327_v44 }
 0x272   : > { %v1539_v29 = vcombine.low %v1929_v19, %v1943_v28  ;;  %v1259_v30 = vpop.f32.mrf.mxu1  ;;  %v1540_v39 = vcombine.high %v1929_v19, %v1943_v28 }
 0x273   : > { %v1531_v33 = vrot.slane %v1523_v27, %v2313_v31  ;;  %v1387_v34 = vcombine.low %v1085_v20, %v1259_v30  ;;  %v1346_v35 = vpop.f32.mrf.mxu0  ;;  %v1388_v51 = vcombine.high %v1085_v20, %v1259_v30  ;;  %v1538_v55 = vrot.slane %v1524_v38, %v2313_v31 }
 0x274   : > { %v1547_v36 = vrot.slane %v1539_v29, %v2313_v31  ;;  %v1403_v16 = vcombine.low %v1172_v23, %v1346_v35  ;;  %v1404_v52 = vcombine.high %v1172_v23, %v1346_v35  ;;  %v1554_v56 = vrot.slane %v1540_v39, %v2313_v31 }
 0x275   : > { %v1395_v37 = vrot.slane %v1387_v34, %v2313_v31  ;;  %v1402_v3 = vrot.slane %v1388_v51, %v2313_v31  ;;  %v1579_v22 = vrot.slane %v1571_v18, %v2327_v44  ;;  %v1572_v27 = vcombine.high %v1506_v63, %v1522_v0 }
 0x276   : > { %v1587_v40 = vcombine.low %v1531_v33, %v1547_v36  ;;  %v1588_v41 = vcombine.high %v1531_v33, %v1547_v36  ;;  %v1411_v46 = vrot.slane %v1403_v16, %v2313_v31  ;;  %v1418_v4 = vrot.slane %v1404_v52, %v2313_v31 }
 0x277   : > { %v1603_v7 = vcombine.low %v1538_v55, %v1554_v56  ;;  %v1604_v24 = vcombine.high %v1538_v55, %v1554_v56  ;;  %v1586_v33 = vrot.slane %v1572_v27, %v2327_v44  ;;  %v1450_v36 = vrot.slane %v1436_v10, %v2327_v44 }
 0x278   : > { %v2451_v50 = vrot.slane %v1587_v40, %v2327_v44  ;;  %v1451_v53 = vcombine.low %v1395_v37, %v1411_v46  ;;  %v1452_v54 = vcombine.high %v1395_v37, %v1411_v46  ;;  %v1602_v58 = vrot.slane %v1588_v41, %v2327_v44 }
 0x279   : > { %v1467_v19 = vcombine.low %v1402_v3, %v1418_v4  ;;  %v1611_v20 = vrot.slane %v1603_v7, %v2327_v44  ;;  %v1468_v28 = vcombine.high %v1402_v3, %v1418_v4  ;;  %v1618_v32 = vrot.slane %v1604_v24, %v2327_v44 }
 0x27a   : > { %v1620_v57 = vcombine.high %v2448_v49, %v2451_v50  ;;  %v2464_v62 = vrot.slane %v1451_v53, %v2327_v44  ;;  %v1619_v2 = vcombine.low %v2448_v49, %v2451_v50  ;;  %v1466_v6 = vrot.slane %v1452_v54, %v2327_v44 }
 0x27b   : > { %v1621_v9 = vcombine.low %v1570_v1, %v1602_v58  ;;  %v1622_v17 = vcombine.high %v1570_v1, %v1602_v58  ;;  %v1475_v23 = vrot.slane %v1467_v19, %v2327_v44  ;;  %v1623_v25 = vcombine.low %v1579_v22, %v1611_v20 }
 0x27c   : > { %1656 = vrot.lane.b32.xlu0 %v1620_v57, %s2110_s8  ;;  %v1484_v5 = vcombine.high %v2461_v61, %v2464_v62  ;;  %v1483_v11 = vcombine.low %v2461_v61, %v2464_v62  ;;  %v1485_v8 = vcombine.low %v1434_v14, %v1466_v6  ;;  %v1486_v31 = vcombine.high %v1434_v14, %v1466_v6 }
 0x27d   : > { %v1487_v29 = vcombine.low %v1443_v26, %v1475_v23  ;;  %v1624_v30 = vcombine.high %v1579_v22, %v1611_v20  ;;  %v1488_v34 = vcombine.high %v1443_v26, %v1475_v23  ;;  %v1482_v35 = vrot.slane %v1468_v28, %v2327_v44 }
 0x27e   : > { %1628 = vrot.lane.b32.xlu1 %v1484_v5, %s2110_s8  ;;  %v1625_v15 = vcombine.low %v1586_v33, %v1618_v32  ;;  %v1626_v37 = vcombine.high %v1586_v33, %v1618_v32 }
 0x27f   : > { %v1489_v16 = vcombine.low %v1450_v36, %v1482_v35  ;;  %v1490_v38 = vcombine.high %v1450_v36, %v1482_v35 }
 0x280   : > { %1660 = vrot.lane.b32.xlu0 %v1621_v9, %s2109_s20 }
 0x282   : > { %1632 = vrot.lane.b32.xlu1 %v1485_v8, %s2109_s20 }
 0x284   : > { %1664 = vrot.lane.b32.xlu0 %v1622_v17, %s2108_s14 }
 0x286   : > { %1636 = vrot.lane.b32.xlu1 %v1486_v31, %s2108_s14 }
 0x288   : > { %1668 = vrot.lane.b32.xlu0 %v1623_v25, %s2107_s9 }
 0x28a   : > { %1640 = vrot.lane.b32.xlu1 %v1487_v29, %s2107_s9 }
 0x28c   : > { %1672 = vrot.lane.b32.xlu0 %v1624_v30, %s2106_s7 }
 0x28e   : > { %1644 = vrot.lane.b32.xlu1 %v1488_v34, %s2106_s7 }
 0x290   : > { %1676 = vrot.lane.b32.xlu0 %v1625_v15, %s2104_s5 }
 0x292   : > { %1648 = vrot.lane.b32.xlu1 %v1489_v16, %s2104_s5  ;;  %s2037_s5 = sshll.u32 %s2113_s30, 4  ;;  %s2038_s5 = int_to_ptr.vmem [resolvable:$false] %s2037_s5 }
 0x293   : > { %p2040_p7 = scmp.lt.s32.totalorder %s1721_s11, %s2038_s5 }
 0x294   : > { %1680 = vrot.lane.b32.xlu0 %v1626_v37, %s2105_s6 }
 0x296   : > { %1652 = vrot.lane.b32.xlu1 %v1490_v38, %s2105_s6  ;;  %s2039_s6 = scalar_lea.vmem %s2038_s5, 512 }
 0x297   : > { %p2041_p8 = scmp.lt.s32.totalorder %s2039_s6, %s2033_s26 }
 0x299   : > { %p2042_p10 = por %p2041_p8, %p2040_p7 }
 0x29b   : > { %p2043_p0 = pnand %p2042_p10, %p2036_p5 }
 0x2ee   : > { %v1657_v39 = vpop.permute.xlu0 %1656 }
 0x2ef   : > { %v1696_v48 = vsel %vm658_vm2, %v1619_v2, %v1657_v39 }
 0x2f0   : > { %v1629_v40 = vpop.permute.xlu1 %1628 }
 0x2f1   : > { %v1683_v55 = vsel %vm658_vm2, %v1483_v11, %v1629_v40 }
 0x2f2   : > { %v1661_v41 = vpop.permute.xlu0 %1660 }
 0x2f3   : > { %v1697_v52 = vsel %vm1684_vm3, %v1696_v48, %v1661_v41 }
 0x2f4   : > { %v1633_v42 = vpop.permute.xlu1 %1632 }
 0x2f5   : > { %v1685_v49 = vsel %vm1684_vm3, %v1683_v55, %v1633_v42 }
 0x2f6   : > { %v1665_v43 = vpop.permute.xlu0 %1664 }
 0x2f7   : > { %v1698_v54 = vsel %vm1686_vm4, %v1697_v52, %v1665_v43 }
 0x2f8   : > { %v1637_v45 = vpop.permute.xlu1 %1636 }
 0x2f9   : > { %v1687_v58 = vsel %vm1686_vm4, %v1685_v49, %v1637_v45 }
 0x2fa   : > { %v1669_v46 = vpop.permute.xlu0 %1668 }
 0x2fb   : > { %v1699_v56 = vsel %vm1688_vm5, %v1698_v54, %v1669_v46 }
 0x2fc   : > { %v1641_v44 = vpop.permute.xlu1 %1640 }
 0x2fd   : > { %v1689_v61 = vsel %vm1688_vm5, %v1687_v58, %v1641_v44 }
 0x2fe   : > { %v1673_v47 = vpop.permute.xlu0 %1672 }
 0x2ff   : > { %v1700_v50 = vsel %vm1690_vm6, %v1699_v56, %v1673_v47 }
 0x300   : > { %v1645_v51 = vpop.permute.xlu1 %1644 }
 0x301   : > { %v1691_v63 = vsel %vm1690_vm6, %v1689_v61, %v1645_v51 }
 0x302   : > { %v1677_v53 = vpop.permute.xlu0 %1676 }
 0x303   : > { %v1701_v59 = vsel %vm1692_vm7, %v1700_v50, %v1677_v53 }
 0x304   : > { %v1649_v57 = vpop.permute.xlu1 %1648 }
 0x305   : > { %v1693_v0 = vsel %vm1692_vm7, %v1691_v63, %v1649_v57 }
 0x306   : > { %v1681_v60 = vpop.permute.xlu0 %1680 }
 0x307   : > { %v1702_v62 = vsel %vm1694_vm8, %v1701_v59, %v1681_v60 }
 0x308   : > { %1704 = vst [vmem:[%s230_s10 + $0x8] sm:$0xff] %v1702_v62  ;;  %v1653_v1 = vpop.permute.xlu1 %1652 }
 0x309   : > { %v1695_v2 = vsel %vm1694_vm8, %v1693_v0, %v1653_v1 }
 0x30a   : > { %1703 = vst [vmem:[%s230_s10] sm:$0xff] %v1695_v2 }
 0x30b   : > { %2046 = shalt.err (!%p2043_p0)
}
 0x30c   : > { %s2047_s7 = scalar_lea.hbm %s2525_s29, 256  ;;  %s2051_s14 = scalar_lea.hbm %s2567_s4, 512 }
 0x30d   : > { %p2048_p2 = scmp.ne.s32.totalorder %s2525_s29, %s2047_s7  ;;  %p2052_p3 = scmp.lt.s32.totalorder %s2525_s29, %s2567_s4 }
 0x30e   : > { %p2053_p6 = scmp.lt.s32.totalorder %s2051_s14, %s2047_s7 }
 0x30f   : > { %p2049_p9 = pnand %p2048_p2, %p2576_p13 }
 0x310   : > { %p2054_p11 = por %p2053_p6, %p2052_p3 }
 0x311   : > { %p2050_p1 = pneg %p2049_p9 }
 0x313   : > { %p2055_p12 = pnand %p2054_p11, %p2050_p1 }
 0x315   : > { %2058 = shalt.err (!%p2055_p12)
}
 0x316   : > { %1946 = dma.vmem_to_hbm [thread:$0]  (%p2576_p13), %s1721_s11, 256, %s2525_s29, %s1706_s19  }
 0x317 PF: > { %s1732_s22 = sand.u32 1, %s2085_s15   ;;  %p2577_p4 = scmp.ne.s32.totalorder %s2573_s28, 0 }
 0x318   : > { %p2578_p5 = scmp.ge.s32.totalorder %s2097_s18, 2  ;;  %s1733_s10 = scalar_lea.sflag [#allocation4], %s1732_s22 }
 0x31a   : > { %p1953_p7 = pnand %p2578_p5, %p2577_p4 }
 0x31c   : > { %p1954_p8 = pneg %p1953_p7 }
 0x31e   : > { %2080 = dma.done.wait (%p1954_p8), %s1733_s10, 256  }
 0x31f   : > { %2082 = vsyncadd (%p1954_p8), %s1733_s10, 4294967040  ;;  %p17_p10 = scmp.ge.s32.totalorder %s2164_s21, 4   ;;  %s2579_s15 = smov %s2089_s16 }
 0x320   : > { %s2580_s16 = smov %s2093_s17  ;;  %s2581_s17 = smov %s2176_s24 }
 0x321   : > { %s2582_s18 = smov %s2164_s21  ;;  %19 = sbr.rel (!%p17_p10) target bundleno = 5 (0x5), region = 84 }
 0x326   :  { %1738 = vsyncpa [#allocation3], 1 }
 0x327   :  { %1740 = vsyncpa [#allocation3 + $0x1], 1 }
 0x328   :  { %1741 = vsyncpa [#allocation4], 1 }
 0x329   :  { %1743 = vsyncpa [#allocation4 + $0x1], 1 }

</bundles_post_ra>
